<compile_context>
chip_gen: v6e
topology: v6e:2x2x1
jax: 0.10.0
libtpu: 0.0.40
codegen_flags: <defaults>
</compile_context>

<pallas_src>
import jax
import jax.numpy as jnp
from jax.experimental import pallas as pl
from jax.experimental.pallas import tpu as pltpu


# ---------------------------------------------------------------------------
# Kernel: elementwise copy of the current VMEM tile (VPU path; no MXU).
# ---------------------------------------------------------------------------
def _copy_kernel(x_ref, o_ref):
    o_ref[...] = x_ref[...]


_LANE = 128
_SMALL_BYTES = 2 * 1024 * 1024        # <= 2 MiB: one whole-array block, no grid
_TILE_TARGET_BYTES = 4 * 1024 * 1024  # ~4 MiB per tile in the tiled path
_VMEM_LIMIT_BYTES = 32 * 1024 * 1024  # 2 in-bufs + 2 out-bufs of 4 MiB + headroom


def _sublane_multiple(dtype) -> int:
    """Second-to-last block dim multiple: 8 (4B), 16 (2B), 32 (1B) packing."""
    itemsize = jnp.dtype(dtype).itemsize
    if itemsize >= 4:
        return 8
    if itemsize == 2:
        return 16
    return 32


def _choose_cols(n: int):
    """Widest lane-dense last dim (multiple of 128) that divides n exactly."""
    for w in (4096, 2048, 1024, 512, 256, 128):
        if n % w == 0:
            return w
    return None


def _whole_array_copy(x2d: jax.Array) -> jax.Array:
    """Single whole-array VMEM block: no grid, no per-step overhead."""
    return pl.pallas_call(
        _copy_kernel,
        out_shape=jax.ShapeDtypeStruct(x2d.shape, x2d.dtype),
    )(x2d)


def _identity_pallas_2d(x2d: jax.Array) -> jax.Array:
    rows, cols = x2d.shape
    dtype = x2d.dtype
    itemsize = jnp.dtype(dtype).itemsize
    total_bytes = rows * cols * itemsize

    if total_bytes <= _SMALL_BYTES:
        return _whole_array_copy(x2d)

    sub = _sublane_multiple(dtype)

    # Target ~4 MiB tiles, capped so the grid has at least 2 blocks (lets v7x
    # shard the "parallel" axis across its two TensorCores).
    target_rows = max(sub, (_TILE_TARGET_BYTES // (cols * itemsize)) // sub * sub)
    target_rows = min(target_rows, max(sub, (rows // 2) // sub * sub))

    # Prefer a tile-row count that divides `rows` exactly (no ragged tail);
    # otherwise let Pallas mask the last (partial) block.
    tile_rows = target_rows
    for cand in range(target_rows, 0, -sub):
        if rows % cand == 0:
            tile_rows = cand
            break
    tile_rows = max(sub, min(tile_rows, rows))

    grid = (pl.cdiv(rows, tile_rows),)

    return pl.pallas_call(
        _copy_kernel,
        out_shape=jax.ShapeDtypeStruct((rows, cols), dtype),
        grid_spec=pl.GridSpec(
            grid=grid,
            in_specs=[pl.BlockSpec((tile_rows, cols), lambda i: (i, 0))],
            out_specs=pl.BlockSpec((tile_rows, cols), lambda i: (i, 0)),
        ),
        compiler_params=pltpu.CompilerParams(
            dimension_semantics=("parallel",),
            vmem_limit_bytes=_VMEM_LIMIT_BYTES,
        ),
    )(x2d)


@jax.jit
def base_model_forward(x: jax.Array) -> jax.Array:
    """Pallas 'forward' for the abstract, parameter-free BaseModel (identity).

    Presents the flattened NCHW input as a lane-dense 2-D slab (last dim a
    large multiple of 128 when possible) and copies it through VMEM. All
    reshapes live inside this jit so they lower to bitcasts, not extra HBM
    passes.
    """
    orig_shape = x.shape
    flat = x.reshape(-1)
    n = flat.shape[0]
    if n == 0:
        return x

    itemsize = jnp.dtype(x.dtype).itemsize
    cols = _choose_cols(n)

    if cols is None:
        if n * itemsize <= _SMALL_BYTES:
            # Ragged but small: whole-array block (block == full dims, so the
            # (8,128) divisibility rule does not apply). No pad/slice passes.
            out2d = _whole_array_copy(flat.reshape(1, n))
            return out2d.reshape(orig_shape)
        # Ragged AND large (rare): pad once to a lane multiple.
        # TODO(synk): a masked-store tail inside the kernel would avoid this
        #             extra HBM pass for large ragged sizes.
        pad = (-n) % _LANE
        flat_p = jnp.pad(flat, (0, pad))
        cols_p = _LANE
        rows_p = flat_p.shape[0] // cols_p
        out2d = _identity_pallas_2d(flat_p.reshape(rows_p, cols_p))
        return out2d.reshape(-1)[:n].reshape(orig_shape)

    rows = n // cols
    out2d = _identity_pallas_2d(flat.reshape(rows, cols))
    return out2d.reshape(orig_shape)


def base_model_num_params() -> int:
    """BaseModel.__init__ registers no nn.Parameters -> 0 trainable params."""
    params = {}  # deterministic: the module defines no weights
    return sum(int(jnp.size(p)) for p in params.values())


if __name__ == "__main__":
    key = jax.random.PRNGKey(0)

    # Small NCHW input consistent with a typical vision BaseModel subclass.
    # 2*4*16*16 f32 = 8 KiB -> single whole-array VMEM block (no grid).
    x = jax.random.normal(key, (2, 4, 16, 16), dtype=jnp.float32)
    y = jax.block_until_ready(base_model_forward(x))
    assert y.shape == x.shape and y.dtype == x.dtype
    assert bool(jnp.array_equal(y, x))

    # Larger input to exercise the tiled path (lane-dense 4096-wide tiles,
    # multi-block "parallel" grid): 8*16*128*128 f32 = 4 MiB.
    x_big = jax.random.normal(key, (8, 16, 128, 128), dtype=jnp.float32)
    y_big = jax.block_until_ready(base_model_forward(x_big))
    assert y_big.shape == x_big.shape and y_big.dtype == x_big.dtype
    assert bool(jnp.array_equal(y_big, x_big))

    # Ragged element count (not a multiple of 128), small -> whole-array path.
    x_rag = jax.random.normal(key, (3, 5, 7), dtype=jnp.float32)
    y_rag = jax.block_until_ready(base_model_forward(x_rag))
    assert y_rag.shape == x_rag.shape and bool(jnp.array_equal(y_rag, x_rag))

    assert base_model_num_params() == 0

    print("KERNEL_OK")
</pallas_src>

<mosaic_0001>
module attributes {stable_mosaic.version = 11 : i64} {
  func.func @_copy_kernel(%arg0: memref<1x2048xf32, #tpu.memory_space<vmem>>, %arg1: memref<1x2048xf32, #tpu.memory_space<vmem>>) attributes {dimension_semantics = [], scalar_prefetch = 0 : i64, scratch_operands = 0 : i64, tpu.core_type = #tpu.core_type<tc>} {
    %c0 = arith.constant 0 : index
    %c0_0 = arith.constant 0 : index
    %0 = vector.load %arg0[%c0, %c0_0] : memref<1x2048xf32, #tpu.memory_space<vmem>>, vector<1x2048xf32>
    %c0_1 = arith.constant 0 : index
    %c0_2 = arith.constant 0 : index
    %1 = vector.load %arg1[%c0_1, %c0_2] : memref<1x2048xf32, #tpu.memory_space<vmem>>, vector<1x2048xf32>
    tpu.vector_store %arg1[%c0_1, %c0_2], %0 {strides = array<i32>} : memref<1x2048xf32, #tpu.memory_space<vmem>>, vector<1x2048xf32>,
    return
  }
}

</mosaic_0001>

<bundles_post_ra>
// kernel: base_model_forward.1
= control target key start
LH: loop header
LB: loop body
LE: loop exit
PB: predicated region body
PF: predicated region fallthrough
CT: control target
= control target key end

     0   :  { %s38_s0 = inlined_call_operand.vmem [shape: f32[1,2048], index: 0, kind: input, shape index: {}]   ;;  %s39_s1 = inlined_call_operand.vmem [shape: f32[1,2048], index: 1, kind: output, shape index: {}]  }
   0x1   :  { %v8_v0 = vld [vmem:[%s38_s0] sm:$0xff]  ;;  %v9_v1 = vld [vmem:[%s38_s0 + $0x8] sm:$0xff] }
   0x2   :  { %10 = vst [vmem:[%s39_s1] sm:$0xff] %v8_v0  ;;  %11 = vst [vmem:[%s39_s1 + $0x8] sm:$0xff] %v9_v1 }

</bundles_post_ra>
